<compile_context>
chip_gen: v6e
topology: v6e:2x2x1
jax: 0.10.0
libtpu: 0.0.40
codegen_flags: <defaults>
</compile_context>

<pallas_src>
import functools

import jax
import jax.numpy as jnp
from jax.experimental import pallas as pl
from jax.experimental.pallas import tpu as pltpu


def _se_kernel(x_ref, w1_ref, b1_ref, w2_ref, b2_ref, o_ref, acc_ref, *, inv_hw):
    # x_ref:  (Nb, C, HWb)      acc_ref: (Nb, C) f32 scratch (partial sums)
    # w1_ref: (C, Cr)  b1_ref: (1, Cr)
    # w2_ref: (Cr, C)  b2_ref: (1, C)
    # o_ref:  (Nb, C)
    j = pl.program_id(1)

    @pl.when(j == 0)
    def _():
        acc_ref[...] = jnp.zeros_like(acc_ref)

    # Squeeze: accumulate spatial sum for this HW tile (lane-axis reduction).
    x = x_ref[...].astype(jnp.float32)
    acc_ref[...] += jnp.sum(x, axis=2)

    @pl.when(j == pl.num_programs(1) - 1)
    def _():
        pooled = acc_ref[...] * inv_hw                                  # (Nb, C)
        # conv1 (1x1) + ReLU: (Nb, C) @ (C, Cr) + (1, Cr)
        h = jnp.dot(pooled, w1_ref[...], preferred_element_type=jnp.float32)
        h = jnp.maximum(h + b1_ref[...], 0.0)                           # (Nb, Cr)
        # conv2 (1x1) + Sigmoid: (Nb, Cr) @ (Cr, C) + (1, C)
        y = jnp.dot(h, w2_ref[...], preferred_element_type=jnp.float32)
        y = y + b2_ref[...]                                             # (Nb, C)
        o_ref[...] = (1.0 / (1.0 + jnp.exp(-y))).astype(o_ref.dtype)


def _choose_tiles(N, C, HW, itemsize, target_bytes=4 << 20):
    """Pick (Nb, HWb): batch block and HW block sizes.

    Nb is a multiple of 8 dividing N (or N itself) so the (Nb, C) output block
    satisfies the (8, 128) sublane rule.  Prefer full-HW blocks of ~target
    bytes, prefer leaving >= 2 grid steps (v7x has 2 TensorCores).  If a
    full-HW block is too big, tile HW with a multiple-of-128 divisor instead.
    """
    cands = sorted({n for n in range(8, N + 1, 8) if N % n == 0} | {N})

    fit_full = [nb for nb in cands if nb * C * HW * itemsize <= target_bytes]
    if fit_full:
        multi = [nb for nb in fit_full if N // nb >= 2]
        nb = max(multi) if multi else max(fit_full)
        return nb, HW

    # Large spatial: smallest batch block + tile HW (reduction axis).
    nb = min(cands)
    hwb = None
    t = 128
    while t < HW:
        if HW % t == 0 and nb * C * t * itemsize <= target_bytes:
            hwb = t
        t += 128
    return nb, (hwb if hwb is not None else HW)


def se_conv_block(x, w1, b1, w2, b2):
    """x: (N, C, H, W) f32/bf16 (NCHW).  w1: (C//r, C), b1: (C//r,),
    w2: (C, C//r), b2: (C,).  Returns the SE gate, shape (N, C, 1, 1)."""
    N, C, H, W = x.shape
    Cr = w1.shape[0]
    HW = H * W
    itemsize = x.dtype.itemsize

    nb, hwb = _choose_tiles(N, C, HW, itemsize)
    grid = (N // nb, HW // hwb)

    x_flat = x.reshape(N, C, HW)
    w1t = w1.reshape(Cr, C).T          # (C, Cr)  -> pooled @ w1t
    w2t = w2.reshape(C, Cr).T          # (Cr, C)  -> h @ w2t
    b1r = b1.reshape(1, Cr)
    b2r = b2.reshape(1, C)

    kernel = functools.partial(_se_kernel, inv_hw=1.0 / float(HW))

    out = pl.pallas_call(
        kernel,
        out_shape=jax.ShapeDtypeStruct((N, C), x.dtype),
        grid_spec=pltpu.PrefetchScalarGridSpec(
            num_scalar_prefetch=0,
            grid=grid,
            in_specs=[
                pl.BlockSpec((nb, C, hwb), lambda i, j: (i, 0, j)),  # x tile
                pl.BlockSpec((C, Cr), lambda i, j: (0, 0)),          # w1^T
                pl.BlockSpec((1, Cr), lambda i, j: (0, 0)),          # b1
                pl.BlockSpec((Cr, C), lambda i, j: (0, 0)),          # w2^T
                pl.BlockSpec((1, C), lambda i, j: (0, 0)),           # b2
            ],
            out_specs=pl.BlockSpec((nb, C), lambda i, j: (i, 0)),    # lane-dense
            scratch_shapes=[pltpu.VMEM((nb, C), jnp.float32)],
        ),
        compiler_params=pltpu.CompilerParams(
            dimension_semantics=("parallel", "arbitrary"),
            vmem_limit_bytes=32 * 1024 * 1024,
        ),
    )(x_flat, w1t, b1r, w2t, b2r)

    return out.reshape(N, C, 1, 1)


def se_conv_block_ref(x, w1, b1, w2, b2):
    """Pure-JAX reference matching the PyTorch module semantics."""
    pooled = jnp.mean(x.astype(jnp.float32), axis=(2, 3))    # (N, C)
    h = jnp.maximum(pooled @ w1.T + b1[None, :], 0.0)        # (N, Cr)
    y = h @ w2.T + b2[None, :]                               # (N, C)
    return jax.nn.sigmoid(y)[:, :, None, None]               # (N, C, 1, 1)


if __name__ == "__main__":
    # Small shapes consistent with the module: in_channels=32, r=16 -> hidden=2
    N, C, H, W = 8, 32, 16, 16
    r = 16
    Cr = C // r

    key = jax.random.PRNGKey(0)
    kx, k1, k2, k3, k4 = jax.random.split(key, 5)

    x = jax.random.normal(kx, (N, C, H, W), dtype=jnp.float32)

    # Conv2d 1x1 weights squeezed to 2D:
    #   conv1.weight: (Cr, C, 1, 1) -> (Cr, C); conv2.weight: (C, Cr, 1, 1) -> (C, Cr)
    w1 = jax.random.normal(k1, (Cr, C), dtype=jnp.float32) * 0.1
    b1 = jax.random.normal(k2, (Cr,), dtype=jnp.float32) * 0.1
    w2 = jax.random.normal(k3, (C, Cr), dtype=jnp.float32) * 0.1
    b2 = jax.random.normal(k4, (C,), dtype=jnp.float32) * 0.1

    out = se_conv_block(x, w1, b1, w2, b2)
    out = jax.block_until_ready(out)

    ref = se_conv_block_ref(x, w1, b1, w2, b2)
    assert out.shape == (N, C, 1, 1)
    assert jnp.allclose(out, ref.astype(out.dtype), atol=1e-5, rtol=1e-5)

    print("KERNEL_OK")
</pallas_src>

<mosaic_0001>
module attributes {stable_mosaic.version = 11 : i64} {
  func.func @_se_kernel(%arg0: i32, %arg1: i32, %arg2: memref<8x32x256xf32, #tpu.memory_space<vmem>>, %arg3: memref<32x2xf32, #tpu.memory_space<vmem>>, %arg4: memref<1x2xf32, #tpu.memory_space<vmem>>, %arg5: memref<2x32xf32, #tpu.memory_space<vmem>>, %arg6: memref<1x32xf32, #tpu.memory_space<vmem>>, %arg7: memref<8x32xf32, #tpu.memory_space<vmem>>, %arg8: memref<8x32xf32, #tpu.memory_space<vmem>>) attributes {dimension_semantics = [#tpu.dimension_semantics<parallel>, #tpu.dimension_semantics<arbitrary>], iteration_bounds = array<i64: 1, 1>, scalar_prefetch = 0 : i64, scratch_operands = 1 : i64, tpu.core_type = #tpu.core_type<tc>, window_params = [{transform_indices = @transform_0, window_bounds = array<i64: 8, 32, 256>}, {pipeline_mode = #tpu.pipeline_mode<synchronous>, transform_indices = @transform_1, window_bounds = array<i64: 32, 2>}, {pipeline_mode = #tpu.pipeline_mode<synchronous>, transform_indices = @transform_2, window_bounds = array<i64: 1, 2>}, {pipeline_mode = #tpu.pipeline_mode<synchronous>, transform_indices = @transform_3, window_bounds = array<i64: 2, 32>}, {pipeline_mode = #tpu.pipeline_mode<synchronous>, transform_indices = @transform_4, window_bounds = array<i64: 1, 32>}, {transform_indices = @transform_5, window_bounds = array<i64: 8, 32>}]} {
    %c0_i32 = arith.constant 0 : i32
    %0 = arith.cmpi eq, %arg1, %c0_i32 : i32
    %1 = arith.extui %0 : i1 to i32
    %c0_i32_0 = arith.constant 0 : i32
    %2 = arith.cmpi ne, %1, %c0_i32_0 : i32
    scf.if %2 {
      %cst_9 = arith.constant 0.000000e+00 : f32
      %11 = vector.broadcast %cst_9 : f32 to vector<8x32xf32>
      %c0_10 = arith.constant 0 : index
      %c0_11 = arith.constant 0 : index
      %12 = vector.load %arg8[%c0_10, %c0_11] : memref<8x32xf32, #tpu.memory_space<vmem>>, vector<8x32xf32>
      tpu.vector_store %arg8[%c0_10, %c0_11], %11 {strides = array<i32>} : memref<8x32xf32, #tpu.memory_space<vmem>>, vector<8x32xf32>,
    } else {
    }
    %c0 = arith.constant 0 : index
    %c0_1 = arith.constant 0 : index
    %c0_2 = arith.constant 0 : index
    %3 = vector.load %arg2[%c0, %c0_1, %c0_2] : memref<8x32x256xf32, #tpu.memory_space<vmem>>, vector<8x32x256xf32>
    %c0_3 = arith.constant 0 : index
    %c0_4 = arith.constant 0 : index
    %4 = vector.load %arg8[%c0_3, %c0_4] : memref<8x32xf32, #tpu.memory_space<vmem>>, vector<8x32xf32>
    %cst = arith.constant dense<0.000000e+00> : vector<8x32xf32>
    %5 = vector.multi_reduction <add>, %3, %cst [2] : vector<8x32x256xf32> to vector<8x32xf32>
    %6 = arith.addf %4, %5 : vector<8x32xf32>
    %c0_5 = arith.constant 0 : index
    %c0_6 = arith.constant 0 : index
    %7 = vector.load %arg8[%c0_5, %c0_6] : memref<8x32xf32, #tpu.memory_space<vmem>>, vector<8x32xf32>
    tpu.vector_store %arg8[%c0_5, %c0_6], %6 {strides = array<i32>} : memref<8x32xf32, #tpu.memory_space<vmem>>, vector<8x32xf32>,
    %c0_i32_7 = arith.constant 0 : i32
    %8 = arith.cmpi eq, %arg1, %c0_i32_7 : i32
    %9 = arith.extui %8 : i1 to i32
    %c0_i32_8 = arith.constant 0 : i32
    %10 = arith.cmpi ne, %9, %c0_i32_8 : i32
    scf.if %10 {
      %c0_9 = arith.constant 0 : index
      %c0_10 = arith.constant 0 : index
      %11 = vector.load %arg8[%c0_9, %c0_10] : memref<8x32xf32, #tpu.memory_space<vmem>>, vector<8x32xf32>
      %cst_11 = arith.constant 3.906250e-03 : f32
      %12 = vector.broadcast %cst_11 : f32 to vector<8x32xf32>
      %13 = arith.mulf %11, %12 : vector<8x32xf32>
      %c0_12 = arith.constant 0 : index
      %c0_13 = arith.constant 0 : index
      %14 = vector.load %arg3[%c0_12, %c0_13] : memref<32x2xf32, #tpu.memory_space<vmem>>, vector<32x2xf32>
      %cst_14 = arith.constant dense<0.000000e+00> : vector<8x2xf32>
      %15 = tpu.matmul %13, %14, %cst_14 {dimension_numbers = #tpu.dot_dimension_numbers<[1], [0], [0], [1], [0, 0, 1, 1], [], []>} : vector<8x32xf32>, vector<32x2xf32>, vector<8x2xf32> -> vector<8x2xf32>
      %c0_15 = arith.constant 0 : index
      %c0_16 = arith.constant 0 : index
      %16 = vector.load %arg4[%c0_15, %c0_16] : memref<1x2xf32, #tpu.memory_space<vmem>>, vector<1x2xf32>
      %17 = vector.broadcast %16 : vector<1x2xf32> to vector<8x2xf32>
      %18 = arith.addf %15, %17 : vector<8x2xf32>
      %cst_17 = arith.constant 0.000000e+00 : f32
      %19 = vector.broadcast %cst_17 : f32 to vector<8x2xf32>
      %20 = arith.maximumf %18, %19 : vector<8x2xf32>
      %c0_18 = arith.constant 0 : index
      %c0_19 = arith.constant 0 : index
      %21 = vector.load %arg5[%c0_18, %c0_19] : memref<2x32xf32, #tpu.memory_space<vmem>>, vector<2x32xf32>
      %cst_20 = arith.constant dense<0.000000e+00> : vector<8x32xf32>
      %22 = tpu.matmul %20, %21, %cst_20 {dimension_numbers = #tpu.dot_dimension_numbers<[1], [0], [0], [1], [0, 0, 1, 1], [], []>} : vector<8x2xf32>, vector<2x32xf32>, vector<8x32xf32> -> vector<8x32xf32>
      %c0_21 = arith.constant 0 : index
      %c0_22 = arith.constant 0 : index
      %23 = vector.load %arg6[%c0_21, %c0_22] : memref<1x32xf32, #tpu.memory_space<vmem>>, vector<1x32xf32>
      %24 = vector.broadcast %23 : vector<1x32xf32> to vector<8x32xf32>
      %25 = arith.addf %22, %24 : vector<8x32xf32>
      %cst_23 = arith.constant 0.000000e+00 : f32
      %26 = vector.broadcast %cst_23 : f32 to vector<8x32xf32>
      %27 = arith.subf %26, %25 : vector<8x32xf32>
      %28 = math.exp %27 : vector<8x32xf32>
      %cst_24 = arith.constant 1.000000e+00 : f32
      %29 = vector.broadcast %cst_24 : f32 to vector<8x32xf32>
      %30 = arith.addf %29, %28 : vector<8x32xf32>
      %cst_25 = arith.constant 1.000000e+00 : f32
      %31 = vector.broadcast %cst_25 : f32 to vector<8x32xf32>
      %32 = arith.divf %31, %30 : vector<8x32xf32>
      %c0_26 = arith.constant 0 : index
      %c0_27 = arith.constant 0 : index
      %33 = vector.load %arg7[%c0_26, %c0_27] : memref<8x32xf32, #tpu.memory_space<vmem>>, vector<8x32xf32>
      tpu.vector_store %arg7[%c0_26, %c0_27], %32 {strides = array<i32>} : memref<8x32xf32, #tpu.memory_space<vmem>>, vector<8x32xf32>,
    } else {
    }
    return
  }
  func.func @transform_0(%arg0: i32, %arg1: i32) -> (i32, i32, i32) {
    %c0_i32 = arith.constant 0 : i32
    %c0_i32_0 = arith.constant 0 : i32
    return %arg0, %c0_i32, %arg1 : i32, i32, i32
  }
  func.func @transform_1(%arg0: i32, %arg1: i32) -> (i32, i32) {
    %c0_i32 = arith.constant 0 : i32
    %c0_i32_0 = arith.constant 0 : i32
    %c0_i32_1 = arith.constant 0 : i32
    return %c0_i32, %c0_i32_0 : i32, i32
  }
  func.func @transform_2(%arg0: i32, %arg1: i32) -> (i32, i32) {
    %c0_i32 = arith.constant 0 : i32
    %c0_i32_0 = arith.constant 0 : i32
    %c0_i32_1 = arith.constant 0 : i32
    return %c0_i32, %c0_i32_0 : i32, i32
  }
  func.func @transform_3(%arg0: i32, %arg1: i32) -> (i32, i32) {
    %c0_i32 = arith.constant 0 : i32
    %c0_i32_0 = arith.constant 0 : i32
    %c0_i32_1 = arith.constant 0 : i32
    return %c0_i32, %c0_i32_0 : i32, i32
  }
  func.func @transform_4(%arg0: i32, %arg1: i32) -> (i32, i32) {
    %c0_i32 = arith.constant 0 : i32
    %c0_i32_0 = arith.constant 0 : i32
    %c0_i32_1 = arith.constant 0 : i32
    return %c0_i32, %c0_i32_0 : i32, i32
  }
  func.func @transform_5(%arg0: i32, %arg1: i32) -> (i32, i32) {
    %c0_i32 = arith.constant 0 : i32
    %c0_i32_0 = arith.constant 0 : i32
    return %arg0, %c0_i32 : i32, i32
  }
}

</mosaic_0001>

<bundles_post_ra>
// kernel: tpu_custom_call.1
= control target key start
LH: loop header
LB: loop body
LE: loop exit
PB: predicated region body
PF: predicated region fallthrough
CT: control target
= control target key end

     0   :  { %10 = vsyncpa [#allocation4], 0  ;;  %s860_s0 = inlined_call_operand.hbm [shape: f32[8,32,256], index: 0, kind: input, shape index: {}]   ;;  %s861_s1 = inlined_call_operand.vmem [shape: f32[32,2], index: 1, kind: input, shape index: {}]   ;;  %s862_s2 = inlined_call_operand.vmem [shape: f32[1,2], index: 2, kind: input, shape index: {}]   ;;  %s863_s3 = inlined_call_operand.vmem [shape: f32[2,32], index: 3, kind: input, shape index: {}]   ;;  %s864_s4 = inlined_call_operand.vmem [shape: f32[1,32], index: 4, kind: input, shape index: {}]   ;;  %s865_s5 = inlined_call_operand.hbm [shape: f32[8,32], index: 5, kind: output, shape index: {}]  }
   0x1   :  { %11 = vsyncpa [#allocation5], 0  ;;  %s692_s18 = smov [#allocation3]  }
   0x2   :  { %s17_s19 = sshll.u32 %s692_s18, 4  ;;  %s18_s19 = int_to_ptr.vmem [resolvable:$true] %s17_s19 }
   0x3   :  { %s656_s20 = scalar_lea.vmem %s18_s19, 8192  ;;  %p661_p1 = scmp.lt.s32.totalorder %s18_s19, %s18_s19 }
   0x4   :  { %p657_p0 = scmp.ne.s32.totalorder %s18_s19, %s656_s20  ;;  %p662_p2 = scmp.lt.s32.totalorder %s656_s20, %s656_s20 }
   0x6   :  { %p663_p3 = por %p662_p2, %p661_p1 }
   0x8   :  { %p664_p4 = pnand %p663_p3, %p657_p0 }
   0xa   :  { %667 = shalt.err (!%p664_p4)
}
   0xb   :  { %s693_s21 = smov 256   ;;  %s694_s22 = smov 16  }
   0xc   :  { %23 = dma.hbm_to_vmem [thread:$0]  %s860_s0, 8192, %s18_s19, [#allocation4], %s693_s21, %s693_s21, %s694_s22  }
   0xd   :  { %688 = dma.done.wait [#allocation4], 8192  }
   0xe   :  { %689 = vsyncadd [#allocation4], 4294959104  ;;  %v49_v0 = vld [vmem:[#allocation3 + $0x40] sm:$0xff]  ;;  %v50_v1 = vld [vmem:[#allocation3 + $0x48] sm:$0xff]  ;;  %vm39_vm0 = vcmask 261120   ;;  %vm696_vm1 = vmmov 0  }
   0xf   :  { %v41_v2 = vld [vmem:[#allocation3] sm:$0xff]  ;;  %v118_v3 = vadd.f32 %v50_v1, %v49_v0  ;;  %v42_v4 = vld [vmem:[#allocation3 + $0x8] sm:$0xff]  ;;  %v51_v5 = vld [vmem:[#allocation3 + $0x50] sm:$0xff]  ;;  %vm245_vm2 = vcmask 130112   ;;  %vm252_vm3 = vcmask 195712   ;;  %vm259_vm4 = vcmask 261312  }
  0x10   :  { %v52_v6 = vld [vmem:[#allocation3 + $0x58] sm:$0xff]  ;;  %v106_v7 = vadd.f32 %v42_v4, %v41_v2  ;;  %v43_v8 = vld [vmem:[#allocation3 + $0x10] sm:$0xff]  ;;  %v53_v12 = vld [vmem:[#allocation3 + $0x60] sm:$0xff]  ;;  %vm394_vm5 = vcmask 1041409   ;;  %vm396_vm6 = vcmask 1042434   ;;  %vm398_vm7 = vcmask 1043459  }
  0x11   :  { %v44_v9 = vld [vmem:[#allocation3 + $0x18] sm:$0xff]  ;;  %119 = vadd.xlane.f32.xlu1 %v118_v3  ;;  %v121_v10 = vadd.f32 %v52_v6, %v51_v5  ;;  %v54_v13 = vld [vmem:[#allocation3 + $0x68] sm:$0xff]  ;;  %v45_v14 = vld [vmem:[#allocation3 + $0x20] sm:$0xff]  ;;  %vm400_vm8 = vcmask 1044484   ;;  %vm402_vm9 = vcmask 1045509   ;;  %vm404_vm10 = vcmask 1046534  }
  0x12   :  { %107 = vadd.xlane.f32.xlu0 %v106_v7  ;;  %v109_v11 = vadd.f32 %v44_v9, %v43_v8  ;;  %v46_v15 = vld [vmem:[#allocation3 + $0x28] sm:$0xff]  ;;  %v124_v16 = vadd.f32 %v54_v13, %v53_v12  ;;  %v59_v18 = vld [vmem:[#allocation3 + $0x90] sm:$0xff]  ;;  %v60_v19 = vld [vmem:[#allocation3 + $0x98] sm:$0xff]  ;;  %vm406_vm11 = vcmask 1047559   ;;  %vm514_vm12 = vcmask 1041408  }
  0x13   :  { %v112_v17 = vadd.f32 %v46_v15, %v45_v14  ;;  %v57_v20 = vld [vmem:[#allocation3 + $0x80] sm:$0xff]  ;;  %v58_v21 = vld [vmem:[#allocation3 + $0x88] sm:$0xff]  ;;  %v133_v22 = vadd.f32 %v60_v19, %v59_v18  ;;  %v55_v24 = vld [vmem:[#allocation3 + $0x70] sm:$0xff]  ;;  %vm510_vm13 = vcmask 15360  }
  0x14   :  { %v130_v23 = vadd.f32 %v58_v21, %v57_v20  ;;  %v56_v25 = vld [vmem:[#allocation3 + $0x78] sm:$0xff]  ;;  %v47_v26 = vld [vmem:[#allocation3 + $0x30] sm:$0xff]  ;;  %v65_v30 = vld [vmem:[#allocation3 + $0xc0] sm:$0xff] }
  0x15   :  { %122 = vadd.xlane.f32.xlu1 %v121_v10  ;;  %v48_v27 = vld [vmem:[#allocation3 + $0x38] sm:$0xff]  ;;  %v127_v28 = vadd.f32 %v56_v25, %v55_v24  ;;  %v66_v31 = vld [vmem:[#allocation3 + $0xc8] sm:$0xff]  ;;  %v61_v32 = vld [vmem:[#allocation3 + $0xa0] sm:$0xff] }
  0x16   :  { %110 = vadd.xlane.f32.xlu0 %v109_v11  ;;  %v115_v29 = vadd.f32 %v48_v27, %v47_v26  ;;  %v62_v33 = vld [vmem:[#allocation3 + $0xa8] sm:$0xff]  ;;  %v142_v34 = vadd.f32 %v66_v31, %v65_v30  ;;  %v63_v36 = vld [vmem:[#allocation3 + $0xb0] sm:$0xff]  ;;  %v64_v37 = vld [vmem:[#allocation3 + $0xb8] sm:$0xff] }
  0x17   :  { %v136_v35 = vadd.f32 %v62_v33, %v61_v32  ;;  %v67_v38 = vld [vmem:[#allocation3 + $0xd0] sm:$0xff]  ;;  %v68_v39 = vld [vmem:[#allocation3 + $0xd8] sm:$0xff]  ;;  %v139_v40 = vadd.f32 %v64_v37, %v63_v36  ;;  %v73_v42 = vld [vmem:[#allocation3 + $0x100] sm:$0xff]  ;;  %v695_v32 = vmov 0.0  }
  0x18   :  { %v145_v41 = vadd.f32 %v68_v39, %v67_v38  ;;  %v74_v43 = vld [vmem:[#allocation3 + $0x108] sm:$0xff]  ;;  %v69_v44 = vld [vmem:[#allocation3 + $0xe0] sm:$0xff]  ;;  %v71_v48 = vld [vmem:[#allocation3 + $0xf0] sm:$0xff]  ;;  %622 = vmatprep.subr.mxu0 %v695_v32  ;;  %40 = vst.msk [vmem:[#allocation2] sm:$0xff] %vm39_vm0, %v695_v32  ;;  %633 = vmatprep.subr.mxu1 %v695_v32 }
  0x19   :  { %125 = vadd.xlane.f32.xlu1 %v124_v16  ;;  %v70_v45 = vld [vmem:[#allocation3 + $0xe8] sm:$0xff]  ;;  %v154_v46 = vadd.f32 %v74_v43, %v73_v42  ;;  %v72_v49 = vld [vmem:[#allocation3 + $0xf8] sm:$0xff]  ;;  %v75_v50 = vld [vmem:[#allocation3 + $0x110] sm:$0xff]  ;;  %630 = vmatprep.mubr.msk.f32.mxu0 %vm696_vm1, %v695_v32 }
  0x1a   :  { %113 = vadd.xlane.f32.xlu0 %v112_v17  ;;  %v148_v47 = vadd.f32 %v70_v45, %v69_v44  ;;  %v76_v51 = vld [vmem:[#allocation3 + $0x118] sm:$0xff]  ;;  %v151_v52 = vadd.f32 %v72_v49, %v71_v48  ;;  %v81_v54 = vld [vmem:[#allocation3 + $0x140] sm:$0xff]  ;;  %v82_v55 = vld [vmem:[#allocation3 + $0x148] sm:$0xff]  ;;  %635 = vmatprep.mubr.msk.f32.mxu1 %vm696_vm1, %v695_v32 }
  0x1b   :  { %v157_v53 = vadd.f32 %v76_v51, %v75_v50  ;;  %v77_v56 = vld [vmem:[#allocation3 + $0x120] sm:$0xff]  ;;  %v78_v57 = vld [vmem:[#allocation3 + $0x128] sm:$0xff]  ;;  %v166_v58 = vadd.f32 %v82_v55, %v81_v54  ;;  %v79_v60 = vld [vmem:[#allocation3 + $0x130] sm:$0xff] }
  0x1c   :  { %v160_v59 = vadd.f32 %v78_v57, %v77_v56  ;;  %v80_v61 = vld [vmem:[#allocation3 + $0x138] sm:$0xff]  ;;  %v83_v62 = vld [vmem:[#allocation3 + $0x150] sm:$0xff]  ;;  %v89_v2 = vld [vmem:[#allocation3 + $0x180] sm:$0xff] }
  0x1d   :  { %134 = vadd.xlane.f32.xlu1 %v133_v22  ;;  %v84_v63 = vld [vmem:[#allocation3 + $0x158] sm:$0xff]  ;;  %v163_v0 = vadd.f32 %v80_v61, %v79_v60  ;;  %v90_v3 = vld [vmem:[#allocation3 + $0x188] sm:$0xff]  ;;  %v85_v4 = vld [vmem:[#allocation3 + $0x160] sm:$0xff] }
  0x1e   :  { %131 = vadd.xlane.f32.xlu0 %v130_v23  ;;  %v169_v1 = vadd.f32 %v84_v63, %v83_v62  ;;  %v86_v5 = vld [vmem:[#allocation3 + $0x168] sm:$0xff]  ;;  %v178_v6 = vadd.f32 %v90_v3, %v89_v2  ;;  %v87_v8 = vld [vmem:[#allocation3 + $0x170] sm:$0xff]  ;;  %v88_v9 = vld [vmem:[#allocation3 + $0x178] sm:$0xff] }
  0x1f   :  { %v172_v7 = vadd.f32 %v86_v5, %v85_v4  ;;  %v91_v10 = vld [vmem:[#allocation3 + $0x190] sm:$0xff]  ;;  %v92_v11 = vld [vmem:[#allocation3 + $0x198] sm:$0xff]  ;;  %v175_v12 = vadd.f32 %v88_v9, %v87_v8  ;;  %v97_v14 = vld [vmem:[#allocation3 + $0x1c0] sm:$0xff] }
  0x20   :  { %v181_v13 = vadd.f32 %v92_v11, %v91_v10  ;;  %v98_v15 = vld [vmem:[#allocation3 + $0x1c8] sm:$0xff]  ;;  %v93_v16 = vld [vmem:[#allocation3 + $0x1a0] sm:$0xff]  ;;  %v95_v20 = vld [vmem:[#allocation3 + $0x1b0] sm:$0xff] }
  0x21   :  { %128 = vadd.xlane.f32.xlu1 %v127_v28  ;;  %v94_v17 = vld [vmem:[#allocation3 + $0x1a8] sm:$0xff]  ;;  %v190_v18 = vadd.f32 %v98_v15, %v97_v14  ;;  %v96_v21 = vld [vmem:[#allocation3 + $0x1b8] sm:$0xff]  ;;  %v99_v22 = vld [vmem:[#allocation3 + $0x1d0] sm:$0xff] }
  0x22   :  { %116 = vadd.xlane.f32.xlu0 %v115_v29  ;;  %v184_v19 = vadd.f32 %v94_v17, %v93_v16  ;;  %v100_v23 = vld [vmem:[#allocation3 + $0x1d8] sm:$0xff]  ;;  %v187_v24 = vadd.f32 %v96_v21, %v95_v20  ;;  %v103_v26 = vld [vmem:[#allocation3 + $0x1f0] sm:$0xff]  ;;  %v101_v28 = vld [vmem:[#allocation3 + $0x1e0] sm:$0xff] }
  0x23   :  { %v193_v25 = vadd.f32 %v100_v23, %v99_v22  ;;  %v104_v27 = vld [vmem:[#allocation3 + $0x1f8] sm:$0xff]  ;;  %v102_v29 = vld [vmem:[#allocation3 + $0x1e8] sm:$0xff]  ;;  %v420_v33 = vld [vmem:[%s861_s1 + $0x18] sm:$0xff] }
  0x24   :  { %v199_v30 = vadd.f32 %v104_v27, %v103_v26  ;;  %v196_v31 = vadd.f32 %v102_v29, %v101_v28  ;;  %623 = vmatpush3.msra.mxu0 %v420_v33  ;;  %v417_v36 = vld [vmem:[%s861_s1] sm:$0xff] }
  0x25   :  { %143 = vadd.xlane.f32.xlu1 %v142_v34  ;;  %v419_v34 = vld [vmem:[%s861_s1 + $0x10] sm:$0xff]  ;;  %624 = vmatprep.subr.mxu0 %v695_v32 }
  0x26   :  { %137 = vadd.xlane.f32.xlu0 %v136_v35  ;;  %v418_v35 = vld [vmem:[%s861_s1 + $0x8] sm:$0xff]  ;;  %625 = vmatpush3.msra.mxu0 %v419_v34 }
  0x27   :  { %626 = vmatprep.subr.mxu0 %v695_v32 }
  0x28   :  { %627 = vmatpush3.msra.mxu0 %v418_v35 }
  0x29   :  { %140 = vadd.xlane.f32.xlu1 %v139_v40  ;;  %628 = vmatprep.subr.mxu0 %v695_v32 }
  0x2a   :  { %146 = vadd.xlane.f32.xlu0 %v145_v41  ;;  %629 = vmatpush3.msra.mxu0 %v417_v36 }
  0x2d   :  { %155 = vadd.xlane.f32.xlu1 %v154_v46 }
  0x2e   :  { %149 = vadd.xlane.f32.xlu0 %v148_v47 }
  0x31   :  { %152 = vadd.xlane.f32.xlu1 %v151_v52 }
  0x32   :  { %158 = vadd.xlane.f32.xlu0 %v157_v53  ;;  %v234_v53 = vlaneseq }
  0x34   :  { %v235_v56 = vand.u32 127, %v234_v53  ;;  %v237_v61 = vshrl.u32 %v234_v53, 7 }
  0x35   :  { %167 = vadd.xlane.f32.xlu1 %v166_v58 }
  0x36   :  { %161 = vadd.xlane.f32.xlu0 %v160_v59  ;;  %v240_v57 = vadd.s32 4294967288, %v235_v56  ;;  %v247_v59 = vadd.s32 4294967280, %v235_v56  ;;  %v254_v62 = vadd.s32 4294967272, %v235_v56  ;;  %v768_v3 = vsub.s32 %v235_v56, %v237_v61 }
  0x38   :  { %v760_v63 = vsub.s32 %v240_v57, %v237_v61  ;;  %v770_v4 = vsub.s32 %v254_v62, %v237_v61 }
  0x39   :  { %164 = vadd.xlane.f32.xlu1 %v163_v0 }
  0x3a   :  { %170 = vadd.xlane.f32.xlu0 %v169_v1  ;;  %v764_v1 = vsub.s32 %v247_v59, %v237_v61 }
  0x3d   :  { %179 = vadd.xlane.f32.xlu1 %v178_v6 }
  0x3e   :  { %173 = vadd.xlane.f32.xlu0 %v172_v7 }
  0x41   :  { %176 = vadd.xlane.f32.xlu1 %v175_v12 }
  0x42   :  { %182 = vadd.xlane.f32.xlu0 %v181_v13 }
  0x45   :  { %191 = vadd.xlane.f32.xlu1 %v190_v18 }
  0x46   :  { %185 = vadd.xlane.f32.xlu0 %v184_v19 }
  0x49   :  { %188 = vadd.xlane.f32.xlu1 %v187_v24 }
  0x4a   :  { %194 = vadd.xlane.f32.xlu0 %v193_v25 }
  0x4d   :  { %200 = vadd.xlane.f32.xlu1 %v199_v30 }
  0x4e   :  { %197 = vadd.xlane.f32.xlu0 %v196_v31 }
  0x9a   :  { %v120_v37 = vpop.xlane.xlu1 %119 }
  0x9b   :  { %v108_v38 = vpop.xlane.xlu0 %107  ;;  %v264_v11 = vrot.slane %v120_v37, %v768_v3 }
  0x9c   :  { %v239_v12 = vrot.slane %v108_v38, %v768_v3 }
  0x9e   :  { %v123_v39 = vpop.xlane.xlu1 %122 }
  0x9f   :  { %v111_v40 = vpop.xlane.xlu0 %110  ;;  %v268_v5 = vrot.slane %v123_v39, %v760_v63 }
  0xa0   :  { %v244_v6 = vrot.slane %v111_v40, %v760_v63 }
  0xa1   :  { %v269_v15 = vsel %vm245_vm2, %v268_v5, %v264_v11 }
  0xa2   :  { %v126_v41 = vpop.xlane.xlu1 %125  ;;  %v246_v16 = vsel %vm245_vm2, %v244_v6, %v239_v12 }
  0xa3   :  { %v114_v42 = vpop.xlane.xlu0 %113  ;;  %v273_v8 = vrot.slane %v126_v41, %v764_v1 }
  0xa4   :  { %v251_v9 = vrot.slane %v114_v42, %v764_v1 }
  0xa5   :  { %v274_v18 = vsel %vm252_vm3, %v273_v8, %v269_v15 }
  0xa6   :  { %v135_v43 = vpop.xlane.xlu1 %134  ;;  %v253_v19 = vsel %vm252_vm3, %v251_v9, %v246_v16 }
  0xa7   :  { %v132_v44 = vpop.xlane.xlu0 %131  ;;  %v287_v20 = vrot.slane %v135_v43, %v760_v63 }
  0xa8   :  { %v283_v21 = vrot.slane %v132_v44, %v768_v3 }
  0xaa   :  { %v129_v45 = vpop.xlane.xlu1 %128  ;;  %v288_v28 = vsel %vm245_vm2, %v287_v20, %v283_v21 }
  0xab   :  { %v117_v46 = vpop.xlane.xlu0 %116  ;;  %v278_v13 = vrot.slane %v129_v45, %v770_v4 }
  0xac   :  { %v258_v14 = vrot.slane %v117_v46, %v770_v4 }
  0xad   :  { %v279_v23 = vsel %vm259_vm4, %v278_v13, %v274_v18  ;;  %v105_v13 = vld [vmem:[#allocation2] sm:$0xff] }
  0xae   :  { %v744_v47 = vpop.xlane.xlu1 %143  ;;  %v260_v24 = vsel %vm259_vm4, %v258_v14, %v253_v19  ;;  %v610_v19 = vld [vmem:[%s862_s2] ss:$0 sm:$0xff]  ;;  %s697_s2 = smov [#allocation6]  }
  0xaf   :  { %v138_v48 = vpop.xlane.xlu0 %137  ;;  %v395_v29 = vsel %vm394_vm5, %v279_v23, %v260_v24  ;;  %v302_v32 = vrot.slane %v744_v47, %v768_v3  ;;  %v612_v24 = vld [vmem:[%s864_s4] ss:$0 sm:$0xff] }
  0xb0   :  { %v292_v25 = vrot.slane %v138_v48, %v764_v1 }
  0xb2   :  { %v141_v49 = vpop.xlane.xlu1 %140  ;;  %v293_v33 = vsel %vm252_vm3, %v292_v25, %v288_v28 }
  0xb3   :  { %v746_v50 = vpop.xlane.xlu0 %146  ;;  %v297_v26 = vrot.slane %v141_v49, %v770_v4 }
  0xb4   :  { %v306_v30 = vrot.slane %v746_v50, %v760_v63 }
  0xb5   :  { %v298_v36 = vsel %vm259_vm4, %v297_v26, %v293_v33 }
  0xb6   :  { %v748_v51 = vpop.xlane.xlu1 %155  ;;  %v307_v45 = vsel %vm245_vm2, %v306_v30, %v302_v32 }
  0xb7   :  { %v750_v52 = vpop.xlane.xlu0 %149  ;;  %v321_v40 = vrot.slane %v748_v51, %v768_v3 }
  0xb8   :  { %v311_v34 = vrot.slane %v750_v52, %v764_v1 }
  0xba   :  { %v752_v54 = vpop.xlane.xlu1 %152  ;;  %v312_v50 = vsel %vm252_vm3, %v311_v34, %v307_v45 }
  0xbb   :  { %v754_v55 = vpop.xlane.xlu0 %158  ;;  %v316_v37 = vrot.slane %v752_v54, %v770_v4 }
  0xbc   :  { %v325_v35 = vrot.slane %v754_v55, %v760_v63 }
  0xbd   :  { %v317_v54 = vsel %vm259_vm4, %v316_v37, %v312_v50 }
  0xbe   :  { %v756_v58 = vpop.xlane.xlu1 %167  ;;  %v326_v51 = vsel %vm245_vm2, %v325_v35, %v321_v40 }
  0xbf   :  { %v758_v60 = vpop.xlane.xlu0 %161  ;;  %v340_v46 = vrot.slane %v756_v58, %v768_v3  ;;  %v397_v58 = vsel %vm396_vm6, %v298_v36, %v395_v29 }
  0xc0   :  { %v330_v38 = vrot.slane %v758_v60, %v764_v1 }
  0xc2   :  { %v762_v0 = vpop.xlane.xlu1 %164  ;;  %v331_v55 = vsel %vm252_vm3, %v330_v38, %v326_v51 }
  0xc3   :  { %v766_v2 = vpop.xlane.xlu0 %170  ;;  %v335_v41 = vrot.slane %v762_v0, %v770_v4 }
  0xc4   :  { %v344_v39 = vrot.slane %v766_v2, %v760_v63 }
  0xc5   :  { %v336_v59 = vsel %vm259_vm4, %v335_v41, %v331_v55 }
  0xc6   :  { %v774_v7 = vpop.xlane.xlu1 %179  ;;  %v345_v56 = vsel %vm245_vm2, %v344_v39, %v340_v46 }
  0xc7   :  { %v174_v10 = vpop.xlane.xlu0 %173  ;;  %v359_v52 = vrot.slane %v774_v7, %v768_v3 }
  0xc8   :  { %v349_v42 = vrot.slane %v174_v10, %v764_v1 }
  0xca   :  { %v177_v17 = vpop.xlane.xlu1 %176  ;;  %v350_v60 = vsel %vm252_vm3, %v349_v42, %v345_v56 }
  0xcb   :  { %v183_v22 = vpop.xlane.xlu0 %182  ;;  %v354_v47 = vrot.slane %v177_v17, %v770_v4 }
  0xcc   :  { %v363_v43 = vrot.slane %v183_v22, %v760_v63 }
  0xcd   :  { %v355_v0 = vsel %vm259_vm4, %v354_v47, %v350_v60 }
  0xce   :  { %v192_v27 = vpop.xlane.xlu1 %191  ;;  %v364_v61 = vsel %vm245_vm2, %v363_v43, %v359_v52 }
  0xcf   :  { %v186_v31 = vpop.xlane.xlu0 %185  ;;  %v378_v2 = vrot.slane %v192_v27, %v768_v3 }
  0xd0   :  { %v368_v48 = vrot.slane %v186_v31, %v764_v1 }
  0xd2   :  { %v189_v44 = vpop.xlane.xlu1 %188  ;;  %v369_v5 = vsel %vm252_vm3, %v368_v48, %v364_v61 }
  0xd3   :  { %v195_v49 = vpop.xlane.xlu0 %194  ;;  %v373_v53 = vrot.slane %v189_v44, %v770_v4 }
  0xd4   :  { %v382_v57 = vrot.slane %v195_v49, %v760_v63  ;;  %v399_v63 = vsel %vm398_vm7, %v317_v54, %v397_v58 }
  0xd5   :  { %v374_v8 = vsel %vm259_vm4, %v373_v53, %v369_v5  ;;  %v401_v10 = vsel %vm400_vm8, %v336_v59, %v399_v63 }
  0xd6   :  { %v201_v62 = vpop.xlane.xlu1 %200  ;;  %v383_v11 = vsel %vm245_vm2, %v382_v57, %v378_v2  ;;  %v403_v12 = vsel %vm402_vm9, %v355_v0, %v401_v10 }
  0xd7   :  { %v198_v6 = vpop.xlane.xlu0 %197  ;;  %v392_v7 = vrot.slane %v201_v62, %v770_v4  ;;  %v405_v14 = vsel %vm404_vm10, %v374_v8, %v403_v12 }
  0xd8   :  { %v387_v9 = vrot.slane %v198_v6, %v764_v1  ;;  %v502_v1 = vld [vmem:[%s863_s3] sm:$0x3]  ;;  %s601_s3 = sshll.u32 %s697_s2, 4  ;;  %s602_s3 = int_to_ptr.vmem [resolvable:$true] %s601_s3 }
  0xd9   :  { %634 = vmatpush3.msk.msra.mxu1 %vm514_vm12, %v502_v1  ;;  %s668_s12 = scalar_lea.vmem %s602_s3, 128  ;;  %p673_p6 = scmp.lt.s32.totalorder %s602_s3, %s602_s3 }
  0xda   :  { %v388_v3 = vsel %vm252_vm3, %v387_v9, %v383_v11  ;;  %p669_p5 = scmp.ne.s32.totalorder %s602_s3, %s668_s12  ;;  %p674_p7 = scmp.lt.s32.totalorder %s668_s12, %s668_s12 }
  0xdb   :  { %v393_v4 = vsel %vm259_vm4, %v392_v7, %v388_v3 }
  0xdc   :  { %v407_v15 = vsel %vm406_vm11, %v393_v4, %v405_v14  ;;  %p675_p8 = por %p674_p7, %p673_p6 }
  0xdd   :  { %v409_v16 = vadd.f32 %v407_v15, %v105_v13 }
  0xde   :  { %p676_p9 = pnand %p675_p8, %p669_p5 }
  0xdf   :  { %411 = vst.msk [vmem:[#allocation2] sm:$0xff] %vm39_vm0, %v409_v16 }
  0xe6   :  { %v415_v17 = vld [vmem:[#allocation2] sm:$0xff] }
  0xe7   :  { %v416_v18 = vmul.f32 0.00390625, %v415_v17 }
  0xe9   :  { %631 = vmatmul.mubr.msk.f32.vlgmr.msra.gmra.mxu0 %vm39_vm0, %v416_v18 }
 0x1a9   :  { %v497_v20 = vpop.f32.mrf.mxu0 }
 0x1aa   :  { %v498_v21 = vadd.f32 %v610_v19, %v497_v20 }
 0x1ab   :  { %v632_v22 = vpop.f32.mrf.mxu0 }
 0x1ac   :  { %v501_v23 = vmax.f32 %v498_v21, 0.0 }
 0x1ae   :  { %636 = vmatmul.mubr.msk.f32.vlgmr.msra.gmra.mxu1 %vm510_vm13, %v501_v23 }
 0x26e   :  { %v584_v25 = vpop.f32.mrf.mxu1 }
 0x26f   :  { %v585_v26 = vadd.f32 %v612_v24, %v584_v25 }
 0x270   :  { %v637_v27 = vpop.f32.mrf.mxu1 }
 0x271   :  { %v588_v28 = vsub.f32 0.0, %v585_v26 }
 0x273   :  { %v589_v29 = vmul.f32 1.442695, %v588_v28 }
 0x275   :  { %644 = vpow2.f32 %v589_v29 }
 0x282   :  { %v645_v30 = vpop.eup %644 }
 0x283   :  { %v591_v31 = vadd.f32 1.0, %v645_v30 }
 0x285   :  { %646 = vrcp.f32 %v591_v31 }
 0x292   :  { %v647_v32 = vpop.eup %646 }
 0x293   :  { %594 = vst.msk [vmem:[#allocation6] sm:$0xff] %vm39_vm0, %v647_v32 }
 0x294   :  { %679 = shalt.err (!%p676_p9)
}
 0x295   :  { %604 = dma.vmem_to_hbm [thread:$0]  %s602_s3, 128, %s865_s5, [#allocation5]  }
 0x296   :  { %690 = dma.done.wait [#allocation5], 128  }
 0x297   :  { %691 = vsyncadd [#allocation5], 4294967168 }
 0x298   :  { %608 = vsyncpa [#allocation4], 1 }
 0x299   :  { %609 = vsyncpa [#allocation5], 1 }

</bundles_post_ra>
